<compile_context>
chip_gen: v6e
topology: v6e:2x2x1
jax: 0.10.0
libtpu: 0.0.40
codegen_flags: <defaults>
</compile_context>

<pallas_src>
import functools

import jax
import jax.numpy as jnp
from jax.experimental import pallas as pl
from jax.experimental.pallas import tpu as pltpu

_LANES = 128


def _round_up(x, m):
    return ((x + m - 1) // m) * m


def _sublane(itemsize):
    return {4: 8, 2: 16, 1: 32}.get(itemsize, 8)


def _vmem_row_bytes(C, itemsize, target):
    """True per-row VMEM bytes of one pipelined step (double-buffered blocks).

    Every (tb, X) VMEM block is lane-padded to a multiple of 128, so a
    (tb, C<128) logits block and the (tb, 1) label/output blocks each cost a
    full 128-lane row regardless of their logical width.
    """
    logits_row = _round_up(C, _LANES) * itemsize
    out_row = _LANES * itemsize
    lbl_row = 0 if target else _LANES * 4          # int32 labels (untargeted only)
    return 2 * (logits_row + out_row + lbl_row)    # x2: double-buffered


def _choose_block_b(B, C, itemsize, target, vmem_budget=16 * 1024 * 1024):
    """Largest sublane-multiple batch tile whose working set fits the budget."""
    sub = _sublane(itemsize)
    per_row = _vmem_row_bytes(C, itemsize, target)
    tb = max(sub, (vmem_budget // per_row) // sub * sub)
    tb = min(tb, _round_up(max(B, 1), sub))        # never exceed (rounded) batch
    return tb


def _margin_loss_kernel(label_ref, logits_ref, out_ref, *, margin, target):
    logits = logits_ref[...]                                   # (TB, C)
    C = logits.shape[1]

    # (1, C) lane iota; the compare broadcasts against the per-row label, so a
    # full (TB, C) int32 iota is never materialized.
    cls_idx = jax.lax.broadcasted_iota(jnp.int32, (1, C), 1)
    if target:
        is_label = cls_idx == label_ref[0]                     # (1, C); scalar from SMEM
    else:
        is_label = label_ref[...] == cls_idx                   # (TB,1) vs (1,C) -> (TB,C)

    neg_inf = jnp.asarray(-jnp.inf, dtype=logits.dtype)
    # The same mask drives both masked-max reductions.
    correct = jnp.max(jnp.where(is_label, logits, neg_inf),
                      axis=1, keepdims=True)                   # (TB, 1)
    max_other = jnp.max(jnp.where(is_label, neg_inf, logits),
                        axis=1, keepdims=True)                 # (TB, 1)

    diff = (max_other - correct) if target else (correct - max_other)

    m = jnp.asarray(margin, dtype=logits.dtype)
    zero = jnp.asarray(0.0, dtype=logits.dtype)
    out_ref[...] = jnp.maximum(diff + m, zero) - m


def margin_loss(logits, label, *, margin=1.0, target=False, block_b=None):
    """Pallas implementation of MarginLoss.forward.

    logits: (B, C) float array.
    label : (B,) int array of class indices when target=False,
            or a scalar class index (python int or traced) when target=True.
    Returns: (B,) array (same dtype as logits).
    """
    logits = jnp.asarray(logits)
    B, C = logits.shape
    itemsize = jnp.dtype(logits.dtype).itemsize
    sub = _sublane(itemsize)

    if block_b is None:
        tb = _choose_block_b(B, C, itemsize, target)
        # v7x has 2 TensorCores: keep >= 2 blocks on the "parallel" batch axis
        # whenever the batch can be split (no-op on v5e/v6e, 1 TC).
        if B > sub and -(-B // tb) < 2:
            tb = max(sub, _round_up(-(-B // 2), sub))
    else:
        tb = max(sub, _round_up(int(block_b), sub))
        tb = min(tb, _round_up(max(B, 1), sub))
    n_blocks = -(-B // tb)

    kernel = functools.partial(
        _margin_loss_kernel, margin=float(margin), target=bool(target))

    footprint = tb * _vmem_row_bytes(C, itemsize, target)
    vmem_limit = int(min(max(footprint + (6 << 20), 16 << 20), 48 << 20))
    cparams = pltpu.CompilerParams(
        dimension_semantics=("parallel",), vmem_limit_bytes=vmem_limit)
    cost = pl.CostEstimate(
        flops=5 * B * C, transcendentals=0,
        bytes_accessed=B * C * itemsize + B * 4 + B * itemsize)
    out_shape = jax.ShapeDtypeStruct((B, 1), logits.dtype)

    if target:
        # Scalar class index via scalar prefetch (SMEM): no (B, 1) label DMA.
        label_arr = jnp.asarray(label, dtype=jnp.int32).reshape(1)
        grid_spec = pltpu.PrefetchScalarGridSpec(
            num_scalar_prefetch=1,
            grid=(n_blocks,),
            in_specs=[pl.BlockSpec((tb, C), lambda i, lbl: (i, 0))],
            out_specs=pl.BlockSpec((tb, 1), lambda i, lbl: (i, 0)))
        out = pl.pallas_call(
            kernel,
            out_shape=out_shape,
            grid_spec=grid_spec,
            compiler_params=cparams,
            cost_estimate=cost,
        )(label_arr, logits)
    else:
        label_arr = jnp.asarray(label, dtype=jnp.int32).reshape(-1, 1)
        grid_spec = pltpu.PrefetchScalarGridSpec(
            num_scalar_prefetch=0,
            grid=(n_blocks,),
            in_specs=[pl.BlockSpec((tb, 1), lambda i: (i, 0)),
                      pl.BlockSpec((tb, C), lambda i: (i, 0))],
            out_specs=pl.BlockSpec((tb, 1), lambda i: (i, 0)))
        out = pl.pallas_call(
            kernel,
            out_shape=out_shape,
            grid_spec=grid_spec,
            compiler_params=cparams,
            cost_estimate=cost,
        )(label_arr, logits)

    return out[:, 0]


def _margin_loss_ref(logits, label, *, margin=1.0, target=False):
    """Pure-JAX reference mirroring the PyTorch module."""
    B, C = logits.shape
    if target:
        lbl = jnp.full((B,), label)
    else:
        lbl = jnp.asarray(label).reshape(-1)
    one_hot = jax.nn.one_hot(lbl, C, dtype=bool)
    correct = logits[jnp.arange(B), lbl]
    max_other = jnp.max(jnp.where(one_hot, -jnp.inf, logits), axis=1)
    diff = (max_other - correct) if target else (correct - max_other)
    return jnp.maximum(diff + margin, 0.0) - margin


if __name__ == "__main__":
    key = jax.random.PRNGKey(0)
    k1, k2, k3, k4 = jax.random.split(key, 4)

    # Small shapes matching the module's typical use (classifier logits).
    B, C = 4, 10
    logits = jax.random.normal(k1, (B, C), dtype=jnp.float32)
    label = jax.random.randint(k2, (B,), 0, C, dtype=jnp.int32)

    # Untargeted (module default, target=False); exercises the clipped
    # (block larger than batch) boundary path.
    out = jax.block_until_ready(margin_loss(logits, label, margin=1.0, target=False))
    ref = _margin_loss_ref(logits, label, margin=1.0, target=False)
    assert out.shape == (B,) and out.dtype == logits.dtype
    assert jnp.allclose(out, ref, atol=1e-6), (out, ref)

    # Targeted variant (target=True, scalar label via scalar prefetch).
    tgt = 3
    out_t = jax.block_until_ready(margin_loss(logits, tgt, margin=1.0, target=True))
    ref_t = _margin_loss_ref(logits, tgt, margin=1.0, target=True)
    assert jnp.allclose(out_t, ref_t, atol=1e-6), (out_t, ref_t)

    # Larger batch: auto tile selection (forced >=2 blocks, ragged last block).
    B2, C2 = 100, 37
    logits2 = jax.random.normal(k3, (B2, C2), dtype=jnp.float32)
    label2 = jax.random.randint(k4, (B2,), 0, C2, dtype=jnp.int32)
    out2 = jax.block_until_ready(
        margin_loss(logits2, label2, margin=0.5, target=False))
    ref2 = _margin_loss_ref(logits2, label2, margin=0.5, target=False)
    assert out2.shape == (B2,)
    assert jnp.allclose(out2, ref2, atol=1e-6), (out2, ref2)

    # Same input, explicit small tile: multi-block grid with a clipped
    # (ragged) last block and no wrapper-side padding.
    out3 = jax.block_until_ready(
        margin_loss(logits2, label2, margin=0.5, target=False, block_b=16))
    assert jnp.allclose(out3, ref2, atol=1e-6), (out3, ref2)

    print("KERNEL_OK")
</pallas_src>

<mosaic_0001>
module attributes {stable_mosaic.version = 11 : i64} {
  func.func @_margin_loss_kernel(%arg0: i32, %arg1: memref<8x1xi32, #tpu.memory_space<vmem>>, %arg2: memref<8x10xf32, #tpu.memory_space<vmem>>, %arg3: memref<8x1xf32, #tpu.memory_space<vmem>>) attributes {dimension_semantics = [#tpu.dimension_semantics<parallel>], iteration_bounds = array<i64: 1>, scalar_prefetch = 0 : i64, scratch_operands = 0 : i64, tpu.core_type = #tpu.core_type<tc>, window_params = [{transform_indices = @transform_0, window_bounds = array<i64: 8, 1>}, {transform_indices = @transform_1, window_bounds = array<i64: 8, 10>}, {transform_indices = @transform_2, window_bounds = array<i64: 8, 1>}]} {
    %c0 = arith.constant 0 : index
    %c0_0 = arith.constant 0 : index
    %0 = vector.load %arg2[%c0, %c0_0] : memref<8x10xf32, #tpu.memory_space<vmem>>, vector<8x10xf32>
    %1 = tpu.iota {dimensions = array<i32: 1>} : vector<1x10xi32>
    %c0_1 = arith.constant 0 : index
    %c0_2 = arith.constant 0 : index
    %2 = vector.load %arg1[%c0_1, %c0_2] : memref<8x1xi32, #tpu.memory_space<vmem>>, vector<8x1xi32>
    %3 = vector.broadcast %2 : vector<8x1xi32> to vector<8x10xi32>
    %4 = vector.broadcast %1 : vector<1x10xi32> to vector<8x10xi32>
    %5 = arith.cmpi eq, %3, %4 : vector<8x10xi32>
    %cst = arith.constant 0xFF800000 : f32
    %6 = vector.broadcast %cst : f32 to vector<8x10xf32>
    %7 = arith.select %5, %0, %6 : vector<8x10xi1>, vector<8x10xf32>
    %cst_3 = arith.constant dense<0xFF800000> : vector<8xf32>
    %8 = vector.multi_reduction <maximumf>, %7, %cst_3 [1] : vector<8x10xf32> to vector<8xf32>
    %9 = vector.shape_cast %8 : vector<8xf32> to vector<8x1xf32>
    %cst_4 = arith.constant 0xFF800000 : f32
    %10 = vector.broadcast %cst_4 : f32 to vector<8x10xf32>
    %11 = arith.select %5, %10, %0 : vector<8x10xi1>, vector<8x10xf32>
    %cst_5 = arith.constant dense<0xFF800000> : vector<8xf32>
    %12 = vector.multi_reduction <maximumf>, %11, %cst_5 [1] : vector<8x10xf32> to vector<8xf32>
    %13 = vector.shape_cast %12 : vector<8xf32> to vector<8x1xf32>
    %14 = arith.subf %9, %13 : vector<8x1xf32>
    %cst_6 = arith.constant 1.000000e+00 : f32
    %15 = vector.broadcast %cst_6 : f32 to vector<8x1xf32>
    %16 = arith.addf %14, %15 : vector<8x1xf32>
    %cst_7 = arith.constant 0.000000e+00 : f32
    %17 = vector.broadcast %cst_7 : f32 to vector<8x1xf32>
    %18 = arith.maximumf %16, %17 : vector<8x1xf32>
    %cst_8 = arith.constant 1.000000e+00 : f32
    %19 = vector.broadcast %cst_8 : f32 to vector<8x1xf32>
    %20 = arith.subf %18, %19 : vector<8x1xf32>
    %c0_9 = arith.constant 0 : index
    %c0_10 = arith.constant 0 : index
    %21 = vector.load %arg3[%c0_9, %c0_10] : memref<8x1xf32, #tpu.memory_space<vmem>>, vector<8x1xf32>
    tpu.vector_store %arg3[%c0_9, %c0_10], %20 {strides = array<i32>} : memref<8x1xf32, #tpu.memory_space<vmem>>, vector<8x1xf32>,
    return
  }
  func.func @transform_0(%arg0: i32) -> (i32, i32) {
    %c0_i32 = arith.constant 0 : i32
    %c0_i32_0 = arith.constant 0 : i32
    return %arg0, %c0_i32 : i32, i32
  }
  func.func @transform_1(%arg0: i32) -> (i32, i32) {
    %c0_i32 = arith.constant 0 : i32
    %c0_i32_0 = arith.constant 0 : i32
    return %arg0, %c0_i32 : i32, i32
  }
  func.func @transform_2(%arg0: i32) -> (i32, i32) {
    %c0_i32 = arith.constant 0 : i32
    %c0_i32_0 = arith.constant 0 : i32
    return %arg0, %c0_i32 : i32, i32
  }
}

</mosaic_0001>

<bundles_post_ra>
// kernel: tpu_custom_call.1
= control target key start
LH: loop header
LB: loop body
LE: loop exit
PB: predicated region body
PF: predicated region fallthrough
CT: control target
= control target key end

     0   :  { %v78_v1 = vmov 0   ;;  %v12_v2 = vlaneseq  ;;  %vm20_vm0 = vcmask 80896   ;;  %vm32_vm2 = vcmask 7168   ;;  %s103_s0 = inlined_call_operand.vmem [shape: s32[4,1], index: 0, kind: input, shape index: {}]   ;;  %s104_s1 = inlined_call_operand.vmem [shape: f32[4,10], index: 1, kind: input, shape index: {}]   ;;  %s105_s2 = inlined_call_operand.vmem [shape: f32[4,1], index: 2, kind: output, shape index: {}]  }
   0x1   :  { %v14_v0 = vld [vmem:[%s103_s0] sm:$0xff]  ;;  %77 = vset.pattern.permute.xlu0 %v78_v1 }
   0x2   :  { %16 = vperm.xlu0 %77, %v14_v0   ;;  %v13_v3 = vand.u32 127, %v12_v2  ;;  %v11_v4 = vld [vmem:[%s104_s1] sm:$0xff] }
  0x7d   :  { %v17_v5 = vpop.permute.xlu0 %16 }
  0x7e   :  { %vm18_vm1 = vcmp.eq.s32.totalorder %v17_v5, %v13_v3 }
  0x7f   :  { %v24_v6 = vsel %vm18_vm1, -inf, %v11_v4  ;;  %v19_v7 = vsel %vm18_vm1, %v11_v4, -inf }
  0x80   :  { %v25_v8 = vsel %vm20_vm0, %v24_v6, -inf  ;;  %v21_v9 = vsel %vm20_vm0, %v19_v7, -inf }
  0x81   :  { %26 = vmax.xlane.f32.xlu1 %v25_v8  ;;  %22 = vmax.xlane.f32.xlu0 %v21_v9 }
 0x10a   :  { %v27_v10 = vpop.xlane.xlu1 %26  ;;  %v23_v11 = vpop.xlane.xlu0 %22 }
 0x10b   :  { %v28_v12 = vsub.f32 %v23_v11, %v27_v10 }
 0x10d   :  { %v29_v13 = vadd.f32 1.0, %v28_v12 }
 0x10f   :  { %v30_v14 = vmax.f32 %v29_v13, 0.0 }
 0x111   :  { %v75_v15 = vadd.f32 -1.0, %v30_v14 }
 0x113   :  { %33 = vst.msk [vmem:[#allocation2] sm:$0xff] %vm32_vm2, %v75_v15 }
 0x11a   :  { %v52_v16 = vld [vmem:[#allocation2] sm:$0xf] }
 0x11b   :  { %53 = vst [vmem:[%s105_s2] sm:$0xf] %v52_v16 }

</bundles_post_ra>
